<compile_context>
chip_gen: v7x
topology: tpu7x:2x2x1
jax: 0.10.0
libtpu: 0.0.40
codegen_flags: <defaults>
</compile_context>

<pallas_src>
import functools

import jax
import jax.numpy as jnp
from jax.experimental import pallas as pl
from jax.experimental.pallas import tpu as pltpu


def _ce_kernel(logits_ref, labels_ref, weight_ref, num_ref, den_ref,
               num_acc, den_acc, *,
               ignore_index: int, hw: int, tile_hw: int, t_inner: int,
               need_col_mask: bool):
    c = pl.program_id(1)
    t = pl.program_id(2)

    @pl.when(t == 0)
    def _():
        num_acc[...] = jnp.zeros_like(num_acc)
        den_acc[...] = jnp.zeros_like(den_acc)

    logits = logits_ref[0].astype(jnp.float32)     # (C, TILE_HW), pixels on lanes
    labels = labels_ref[0]                         # (1, TILE_HW) int32
    w = weight_ref[...].astype(jnp.float32)        # (C, 1)

    # valid-pixel mask; ragged-tile column check only compiled when needed
    valid = labels != ignore_index                                   # (1, TILE_HW)
    if need_col_mask:
        col = (jax.lax.broadcasted_iota(jnp.int32, labels.shape, 1)
               + (c * t_inner + t) * tile_hw)
        valid = jnp.logical_and(valid, col < hw)

    # numerically-stable log-sum-exp over the class (sublane) axis
    m = jnp.max(logits, axis=0, keepdims=True)                       # (1, TILE_HW)
    lse = jnp.log(jnp.sum(jnp.exp(logits - m), axis=0, keepdims=True)) + m

    # one-hot gather via broadcast compare + select (no f32 one-hot, no iota
    # of shape (C, TILE_HW))
    cls_ids = jax.lax.broadcasted_iota(jnp.int32, (logits.shape[0], 1), 0)  # (C,1)
    eq = cls_ids == labels                                           # (C, TILE_HW)
    tgt = jnp.sum(jnp.where(eq, logits, 0.0), axis=0, keepdims=True)  # (1, TILE_HW)
    w_per = jnp.sum(jnp.where(eq, w, 0.0), axis=0, keepdims=True)     # (1, TILE_HW)

    nll = lse - tgt                                                  # (1, TILE_HW)
    wv = jnp.where(valid, w_per, 0.0)
    contrib = jnp.where(valid, wv * nll, 0.0)   # where (not mul) so padded-garbage
                                                # columns can never inject NaN/inf

    # lane-dense accumulation: plain vreg adds every step, no XLU reduce and
    # no scalar RMW store until the final tile of this (n, chunk) sweep
    num_acc[...] += contrib
    den_acc[...] += wv

    @pl.when(t == pl.num_programs(2) - 1)
    def _():
        num_ref[0] = jnp.sum(num_acc[...], axis=1, keepdims=True)    # (1, 1)
        den_ref[0] = jnp.sum(den_acc[...], axis=1, keepdims=True)    # (1, 1)


def cross_entropy_loss(cls_score, label, weight, *, ignore_index=255,
                       tile_hw=None):
    """Weighted mean cross-entropy matching F.cross_entropy(..., reduction='mean')."""
    N, C, H, W = cls_score.shape
    HW = H * W

    # Free (contiguous) reshapes only -- no transpose, no pad.  Callers with
    # bf16 logits should pass bf16 (the kernel casts to f32 on-chip).
    logits = cls_score.reshape(N, C, HW)
    labels = label.reshape(N, 1, HW).astype(jnp.int32)
    w = jnp.asarray(weight, dtype=jnp.float32).reshape(C, 1)

    itemsize = jnp.dtype(cls_score.dtype).itemsize

    # Generation-aware VMEM capacity (conservative v7x fallback).
    try:
        vmem_cap = int(getattr(pltpu.get_tpu_info(), "vmem_capacity_bytes",
                               64 * 1024 * 1024))
    except Exception:
        vmem_cap = 64 * 1024 * 1024

    # Per-lane working-set bytes: double-buffered logits + labels inputs,
    # ~4 full-size f32 in-kernel temporaries, and two sublane-padded (1, tile)
    # f32 accumulators.
    per_lane = (2 * C * itemsize     # logits, double-buffered, native dtype
                + 2 * 4              # labels int32, double-buffered
                + 4 * C * 4          # f32 cast / exp / select temporaries
                + 2 * 8 * 4)         # num/den accumulators (8-sublane padded)

    if tile_hw is None:
        budget = min(int(0.45 * vmem_cap), 48 * 1024 * 1024)
        tile_hw = budget // per_lane
        tile_hw = min(tile_hw, 128 * 1024)   # multi-MiB DMAs; no tiny-block cap
        tile_hw = max(tile_hw, 128)
    # clamp to what's actually needed and keep it a multiple of 128 (lanes)
    tile_hw = int(min(tile_hw, pl.cdiv(HW, 128) * 128))
    tile_hw = max(128, (tile_hw // 128) * 128)

    total_tiles = pl.cdiv(HW, tile_hw)

    # Megacore for small/odd batch: split the HW-tile axis into
    # (num_chunks, t_inner) when N alone can't balance two TensorCores.
    if (N % 2 == 1) and (total_tiles % 2 == 0) and (total_tiles >= 2):
        num_chunks = 2
    else:
        num_chunks = 1
    t_inner = total_tiles // num_chunks
    grid = (N, num_chunks, t_inner)

    need_col_mask = (HW % tile_hw) != 0   # static; exact tilings skip masking

    vmem_need = tile_hw * per_lane + 2 * C * 4 + (1 << 16)
    vmem_limit = int(min(max(int(1.3 * vmem_need), 32 * 1024 * 1024),
                         max(vmem_cap - (4 << 20), 32 * 1024 * 1024)))

    kernel = functools.partial(_ce_kernel, ignore_index=ignore_index,
                               hw=HW, tile_hw=tile_hw, t_inner=t_inner,
                               need_col_mask=need_col_mask)

    num, den = pl.pallas_call(
        kernel,
        out_shape=(jax.ShapeDtypeStruct((N * num_chunks, 1, 1), jnp.float32),
                   jax.ShapeDtypeStruct((N * num_chunks, 1, 1), jnp.float32)),
        grid_spec=pltpu.PrefetchScalarGridSpec(
            num_scalar_prefetch=0,
            grid=grid,
            in_specs=[
                pl.BlockSpec((1, C, tile_hw),
                             lambda n, c, t: (n, 0, c * t_inner + t)),  # logits
                pl.BlockSpec((1, 1, tile_hw),
                             lambda n, c, t: (n, 0, c * t_inner + t)),  # labels
                pl.BlockSpec((C, 1), lambda n, c, t: (0, 0)),           # weights
            ],
            out_specs=[
                pl.BlockSpec((1, 1, 1),
                             lambda n, c, t: (n * num_chunks + c, 0, 0)),  # num
                pl.BlockSpec((1, 1, 1),
                             lambda n, c, t: (n * num_chunks + c, 0, 0)),  # den
            ],
            scratch_shapes=[pltpu.VMEM((1, tile_hw), jnp.float32),   # num acc
                            pltpu.VMEM((1, tile_hw), jnp.float32)],  # den acc
        ),
        compiler_params=pltpu.CompilerParams(
            dimension_semantics=("parallel", "parallel", "arbitrary"),
            vmem_limit_bytes=vmem_limit),
    )(logits, labels, w)

    # reduction='mean' with class weights: weighted sum / sum of weights
    return jnp.sum(num) / jnp.sum(den)


def _reference_loss(cls_score, label, weight, ignore_index=255):
    """Plain-JAX reference mirroring F.cross_entropy semantics."""
    N, C, H, W = cls_score.shape
    logits = jnp.transpose(cls_score, (0, 2, 3, 1)).reshape(-1, C).astype(jnp.float32)
    labels = label.reshape(-1).astype(jnp.int32)
    valid = labels != ignore_index
    safe_labels = jnp.where(valid, labels, 0)
    lse = jax.nn.logsumexp(logits, axis=-1)
    tgt = jnp.take_along_axis(logits, safe_labels[:, None], axis=-1)[:, 0]
    nll = lse - tgt
    w_per = jnp.asarray(weight, jnp.float32)[safe_labels]
    wv = jnp.where(valid, w_per, 0.0)
    return jnp.sum(wv * nll) / jnp.sum(wv)


if __name__ == "__main__":
    key = jax.random.PRNGKey(0)
    k1, k2 = jax.random.split(key)

    weight = jnp.array([0.5, 1.0, 1.5, 2.0], dtype=jnp.float32)

    # Case 1: module-sized inputs, HW an exact multiple of the lane tile
    # (mask-free static path).
    N, C, H, W = 2, 4, 16, 16
    cls_score = jax.random.normal(k1, (N, C, H, W), dtype=jnp.float32)
    label = jax.random.randint(k2, (N, H, W), 0, C, dtype=jnp.int32)
    ignore_mask = (jnp.arange(N * H * W).reshape(N, H, W) % 7) == 0
    label = jnp.where(ignore_mask, 255, label)

    loss = cross_entropy_loss(cls_score, label, weight, ignore_index=255)
    loss = jax.block_until_ready(loss)
    ref = _reference_loss(cls_score, label, weight, ignore_index=255)
    assert jnp.allclose(loss, ref, rtol=1e-4, atol=1e-5), (loss, ref)

    # Case 2: ragged spatial size + forced multi-tile to exercise the
    # in-kernel remainder mask and the multi-step lane-dense accumulation.
    H2, W2 = 10, 13
    k3, k4 = jax.random.split(k2)
    cls2 = jax.random.normal(k3, (N, C, H2, W2), dtype=jnp.float32)
    lab2 = jax.random.randint(k4, (N, H2, W2), 0, C, dtype=jnp.int32)
    lab2 = jnp.where((jnp.arange(N * H2 * W2).reshape(N, H2, W2) % 5) == 0,
                     255, lab2)
    loss2 = cross_entropy_loss(cls2, lab2, weight, ignore_index=255, tile_hw=128)
    loss2 = jax.block_until_ready(loss2)
    ref2 = _reference_loss(cls2, lab2, weight, ignore_index=255)
    assert jnp.allclose(loss2, ref2, rtol=1e-4, atol=1e-5), (loss2, ref2)

    # Case 3: N=1 (odd batch) with an even tile count -> exercises the
    # HW-chunk split (grid=(N, 2, t_inner)) used for megacore on v7x.
    H3, W3 = 16, 32
    k5, k6 = jax.random.split(k4)
    cls3 = jax.random.normal(k5, (1, C, H3, W3), dtype=jnp.float32)
    lab3 = jax.random.randint(k6, (1, H3, W3), 0, C, dtype=jnp.int32)
    lab3 = jnp.where((jnp.arange(H3 * W3).reshape(1, H3, W3) % 3) == 0,
                     255, lab3)
    loss3 = cross_entropy_loss(cls3, lab3, weight, ignore_index=255, tile_hw=128)
    loss3 = jax.block_until_ready(loss3)
    ref3 = _reference_loss(cls3, lab3, weight, ignore_index=255)
    assert jnp.allclose(loss3, ref3, rtol=1e-4, atol=1e-5), (loss3, ref3)

    print("KERNEL_OK")
</pallas_src>

<mosaic_0001>
module attributes {stable_mosaic.version = 11 : i64} {
  func.func @_ce_kernel(%arg0: i32, %arg1: i32, %arg2: i32, %arg3: memref<1x4x256xf32, #tpu.memory_space<vmem>>, %arg4: memref<1x1x256xi32, #tpu.memory_space<vmem>>, %arg5: memref<4x1xf32, #tpu.memory_space<vmem>>, %arg6: memref<1x1x1xf32, #tpu.memory_space<vmem>>, %arg7: memref<1x1x1xf32, #tpu.memory_space<vmem>>, %arg8: memref<1x256xf32, #tpu.memory_space<vmem>>, %arg9: memref<1x256xf32, #tpu.memory_space<vmem>>) attributes {dimension_semantics = [#tpu.dimension_semantics<parallel>, #tpu.dimension_semantics<parallel>, #tpu.dimension_semantics<arbitrary>], iteration_bounds = array<i64: 2, 1, 1>, scalar_prefetch = 0 : i64, scratch_operands = 2 : i64, tpu.core_type = #tpu.core_type<tc>, window_params = [{transform_indices = @transform_0, window_bounds = array<i64: 1, 4, 256>}, {transform_indices = @transform_1, window_bounds = array<i64: 1, 1, 256>}, {pipeline_mode = #tpu.pipeline_mode<synchronous>, transform_indices = @transform_2, window_bounds = array<i64: 4, 1>}, {transform_indices = @transform_3, window_bounds = array<i64: 1, 1, 1>}, {transform_indices = @transform_4, window_bounds = array<i64: 1, 1, 1>}]} {
    %c0_i32 = arith.constant 0 : i32
    %0 = arith.cmpi eq, %arg2, %c0_i32 : i32
    %1 = arith.extui %0 : i1 to i32
    %c0_i32_0 = arith.constant 0 : i32
    %2 = arith.cmpi ne, %1, %c0_i32_0 : i32
    scf.if %2 {
      %cst_25 = arith.constant 0.000000e+00 : f32
      %48 = vector.broadcast %cst_25 : f32 to vector<1x256xf32>
      %c0_26 = arith.constant 0 : index
      %c0_27 = arith.constant 0 : index
      %49 = vector.load %arg8[%c0_26, %c0_27] : memref<1x256xf32, #tpu.memory_space<vmem>>, vector<1x256xf32>
      tpu.vector_store %arg8[%c0_26, %c0_27], %48 {strides = array<i32>} : memref<1x256xf32, #tpu.memory_space<vmem>>, vector<1x256xf32>,
      %cst_28 = arith.constant 0.000000e+00 : f32
      %50 = vector.broadcast %cst_28 : f32 to vector<1x256xf32>
      %c0_29 = arith.constant 0 : index
      %c0_30 = arith.constant 0 : index
      %51 = vector.load %arg9[%c0_29, %c0_30] : memref<1x256xf32, #tpu.memory_space<vmem>>, vector<1x256xf32>
      tpu.vector_store %arg9[%c0_29, %c0_30], %50 {strides = array<i32>} : memref<1x256xf32, #tpu.memory_space<vmem>>, vector<1x256xf32>,
    } else {
    }
    %c0 = arith.constant 0 : index
    %c0_1 = arith.constant 0 : index
    %c0_2 = arith.constant 0 : index
    %3 = vector.load %arg3[%c0, %c0_1, %c0_2] : memref<1x4x256xf32, #tpu.memory_space<vmem>>, vector<1x4x256xf32>
    %4 = vector.shape_cast %3 : vector<1x4x256xf32> to vector<4x256xf32>
    %c0_3 = arith.constant 0 : index
    %c0_4 = arith.constant 0 : index
    %c0_5 = arith.constant 0 : index
    %5 = vector.load %arg4[%c0_3, %c0_4, %c0_5] : memref<1x1x256xi32, #tpu.memory_space<vmem>>, vector<1x1x256xi32>
    %6 = vector.shape_cast %5 : vector<1x1x256xi32> to vector<1x256xi32>
    %c0_6 = arith.constant 0 : index
    %c0_7 = arith.constant 0 : index
    %7 = vector.load %arg5[%c0_6, %c0_7] : memref<4x1xf32, #tpu.memory_space<vmem>>, vector<4x1xf32>
    %c255_i32 = arith.constant 255 : i32
    %8 = vector.broadcast %c255_i32 : i32 to vector<1x256xi32>
    %9 = arith.cmpi ne, %6, %8 : vector<1x256xi32>
    %cst = arith.constant dense<0xFF800000> : vector<256xf32>
    %10 = vector.multi_reduction <maximumf>, %4, %cst [0] : vector<4x256xf32> to vector<256xf32>
    %11 = vector.shape_cast %10 : vector<256xf32> to vector<1x256xf32>
    %12 = vector.broadcast %11 : vector<1x256xf32> to vector<4x256xf32>
    %13 = arith.subf %4, %12 : vector<4x256xf32>
    %14 = math.exp %13 : vector<4x256xf32>
    %cst_8 = arith.constant dense<0.000000e+00> : vector<256xf32>
    %15 = vector.multi_reduction <add>, %14, %cst_8 [0] : vector<4x256xf32> to vector<256xf32>
    %16 = vector.shape_cast %15 : vector<256xf32> to vector<1x256xf32>
    %17 = math.log %16 : vector<1x256xf32>
    %18 = arith.addf %17, %11 : vector<1x256xf32>
    %19 = tpu.iota {dimensions = array<i32: 0>} : vector<4x1xi32>
    %20 = vector.broadcast %19 : vector<4x1xi32> to vector<4x256xi32>
    %21 = vector.broadcast %6 : vector<1x256xi32> to vector<4x256xi32>
    %22 = arith.cmpi eq, %20, %21 : vector<4x256xi32>
    %cst_9 = arith.constant 0.000000e+00 : f32
    %23 = vector.broadcast %cst_9 : f32 to vector<4x256xf32>
    %24 = arith.select %22, %4, %23 : vector<4x256xi1>, vector<4x256xf32>
    %cst_10 = arith.constant dense<0.000000e+00> : vector<256xf32>
    %25 = vector.multi_reduction <add>, %24, %cst_10 [0] : vector<4x256xf32> to vector<256xf32>
    %26 = vector.shape_cast %25 : vector<256xf32> to vector<1x256xf32>
    %cst_11 = arith.constant 0.000000e+00 : f32
    %27 = vector.shape_cast %7 : vector<4x1xf32> to vector<4x1xf32>
    %28 = vector.broadcast %27 : vector<4x1xf32> to vector<4x256xf32>
    %29 = vector.broadcast %cst_11 : f32 to vector<4x256xf32>
    %30 = arith.select %22, %28, %29 : vector<4x256xi1>, vector<4x256xf32>
    %cst_12 = arith.constant dense<0.000000e+00> : vector<256xf32>
    %31 = vector.multi_reduction <add>, %30, %cst_12 [0] : vector<4x256xf32> to vector<256xf32>
    %32 = vector.shape_cast %31 : vector<256xf32> to vector<1x256xf32>
    %33 = arith.subf %18, %26 : vector<1x256xf32>
    %cst_13 = arith.constant 0.000000e+00 : f32
    %34 = vector.broadcast %cst_13 : f32 to vector<1x256xf32>
    %35 = arith.select %9, %32, %34 : vector<1x256xi1>, vector<1x256xf32>
    %36 = arith.mulf %35, %33 : vector<1x256xf32>
    %cst_14 = arith.constant 0.000000e+00 : f32
    %37 = vector.broadcast %cst_14 : f32 to vector<1x256xf32>
    %38 = arith.select %9, %36, %37 : vector<1x256xi1>, vector<1x256xf32>
    %c0_15 = arith.constant 0 : index
    %c0_16 = arith.constant 0 : index
    %39 = vector.load %arg8[%c0_15, %c0_16] : memref<1x256xf32, #tpu.memory_space<vmem>>, vector<1x256xf32>
    %40 = arith.addf %39, %38 : vector<1x256xf32>
    %c0_17 = arith.constant 0 : index
    %c0_18 = arith.constant 0 : index
    %41 = vector.load %arg8[%c0_17, %c0_18] : memref<1x256xf32, #tpu.memory_space<vmem>>, vector<1x256xf32>
    tpu.vector_store %arg8[%c0_17, %c0_18], %40 {strides = array<i32>} : memref<1x256xf32, #tpu.memory_space<vmem>>, vector<1x256xf32>,
    %c0_19 = arith.constant 0 : index
    %c0_20 = arith.constant 0 : index
    %42 = vector.load %arg9[%c0_19, %c0_20] : memref<1x256xf32, #tpu.memory_space<vmem>>, vector<1x256xf32>
    %43 = arith.addf %42, %35 : vector<1x256xf32>
    %c0_21 = arith.constant 0 : index
    %c0_22 = arith.constant 0 : index
    %44 = vector.load %arg9[%c0_21, %c0_22] : memref<1x256xf32, #tpu.memory_space<vmem>>, vector<1x256xf32>
    tpu.vector_store %arg9[%c0_21, %c0_22], %43 {strides = array<i32>} : memref<1x256xf32, #tpu.memory_space<vmem>>, vector<1x256xf32>,
    %c0_i32_23 = arith.constant 0 : i32
    %45 = arith.cmpi eq, %arg2, %c0_i32_23 : i32
    %46 = arith.extui %45 : i1 to i32
    %c0_i32_24 = arith.constant 0 : i32
    %47 = arith.cmpi ne, %46, %c0_i32_24 : i32
    scf.if %47 {
      %c0_25 = arith.constant 0 : index
      %c0_26 = arith.constant 0 : index
      %48 = vector.load %arg8[%c0_25, %c0_26] : memref<1x256xf32, #tpu.memory_space<vmem>>, vector<1x256xf32>
      %cst_27 = arith.constant dense<0.000000e+00> : vector<1xf32>
      %49 = vector.multi_reduction <add>, %48, %cst_27 [1] : vector<1x256xf32> to vector<1xf32>
      %50 = vector.shape_cast %49 : vector<1xf32> to vector<1x1xf32>
      %c0_28 = arith.constant 0 : index
      %c0_29 = arith.constant 0 : index
      %c0_30 = arith.constant 0 : index
      %51 = vector.load %arg6[%c0_28, %c0_29, %c0_30] : memref<1x1x1xf32, #tpu.memory_space<vmem>>, vector<1x1x1xf32>
      %52 = vector.shape_cast %51 : vector<1x1x1xf32> to vector<1x1xf32>
      %53 = vector.shape_cast %50 : vector<1x1xf32> to vector<1x1x1xf32>
      tpu.vector_store %arg6[%c0_28, %c0_29, %c0_30], %53 {strides = array<i32>} : memref<1x1x1xf32, #tpu.memory_space<vmem>>, vector<1x1x1xf32>,
      %c0_31 = arith.constant 0 : index
      %c0_32 = arith.constant 0 : index
      %54 = vector.load %arg9[%c0_31, %c0_32] : memref<1x256xf32, #tpu.memory_space<vmem>>, vector<1x256xf32>
      %cst_33 = arith.constant dense<0.000000e+00> : vector<1xf32>
      %55 = vector.multi_reduction <add>, %54, %cst_33 [1] : vector<1x256xf32> to vector<1xf32>
      %56 = vector.shape_cast %55 : vector<1xf32> to vector<1x1xf32>
      %c0_34 = arith.constant 0 : index
      %c0_35 = arith.constant 0 : index
      %c0_36 = arith.constant 0 : index
      %57 = vector.load %arg7[%c0_34, %c0_35, %c0_36] : memref<1x1x1xf32, #tpu.memory_space<vmem>>, vector<1x1x1xf32>
      %58 = vector.shape_cast %57 : vector<1x1x1xf32> to vector<1x1xf32>
      %59 = vector.shape_cast %56 : vector<1x1xf32> to vector<1x1x1xf32>
      tpu.vector_store %arg7[%c0_34, %c0_35, %c0_36], %59 {strides = array<i32>} : memref<1x1x1xf32, #tpu.memory_space<vmem>>, vector<1x1x1xf32>,
    } else {
    }
    return
  }
  func.func @transform_0(%arg0: i32, %arg1: i32, %arg2: i32) -> (i32, i32, i32) {
    %c1_i32 = arith.constant 1 : i32
    %0 = arith.muli %arg1, %c1_i32 : i32
    %1 = arith.addi %0, %arg2 : i32
    %c0_i32 = arith.constant 0 : i32
    %c0_i32_0 = arith.constant 0 : i32
    return %arg0, %c0_i32, %1 : i32, i32, i32
  }
  func.func @transform_1(%arg0: i32, %arg1: i32, %arg2: i32) -> (i32, i32, i32) {
    %c1_i32 = arith.constant 1 : i32
    %0 = arith.muli %arg1, %c1_i32 : i32
    %1 = arith.addi %0, %arg2 : i32
    %c0_i32 = arith.constant 0 : i32
    %c0_i32_0 = arith.constant 0 : i32
    return %arg0, %c0_i32, %1 : i32, i32, i32
  }
  func.func @transform_2(%arg0: i32, %arg1: i32, %arg2: i32) -> (i32, i32) {
    %c0_i32 = arith.constant 0 : i32
    %c0_i32_0 = arith.constant 0 : i32
    %c0_i32_1 = arith.constant 0 : i32
    return %c0_i32, %c0_i32_0 : i32, i32
  }
  func.func @transform_3(%arg0: i32, %arg1: i32, %arg2: i32) -> (i32, i32, i32) {
    %c1_i32 = arith.constant 1 : i32
    %0 = arith.muli %arg0, %c1_i32 : i32
    %1 = arith.addi %0, %arg1 : i32
    %c0_i32 = arith.constant 0 : i32
    %c0_i32_0 = arith.constant 0 : i32
    %c0_i32_1 = arith.constant 0 : i32
    return %1, %c0_i32, %c0_i32_0 : i32, i32, i32
  }
  func.func @transform_4(%arg0: i32, %arg1: i32, %arg2: i32) -> (i32, i32, i32) {
    %c1_i32 = arith.constant 1 : i32
    %0 = arith.muli %arg0, %c1_i32 : i32
    %1 = arith.addi %0, %arg1 : i32
    %c0_i32 = arith.constant 0 : i32
    %c0_i32_0 = arith.constant 0 : i32
    %c0_i32_1 = arith.constant 0 : i32
    return %1, %c0_i32, %c0_i32_0 : i32, i32, i32
  }
}

</mosaic_0001>

<bundles_post_ra>
// kernel: tpu_custom_call.1
= control target key start
LH: loop header
LB: loop body
LE: loop exit
PB: predicated region body
PF: predicated region fallthrough
CT: control target
= control target key end

     0   :  { %10 = vsyncpa [#allocation5], 0  ;;  %s1009_s0 = inlined_call_operand.hbm [shape: f32[2,4,256], index: 0, kind: input, shape index: {}]   ;;  %s1010_s1 = inlined_call_operand.vmem [shape: s32[2,1,256], index: 1, kind: input, shape index: {}]   ;;  %s1011_s2 = inlined_call_operand.vmem [shape: f32[4,1], index: 2, kind: input, shape index: {}]   ;;  %s1012_s3 = inlined_call_operand.vmem [shape: f32[2,1,1], index: 3, kind: output, shape index: {0}]   ;;  %s1013_s4 = inlined_call_operand.vmem [shape: f32[2,1,1], index: 4, kind: output, shape index: {1}]  }
   0x1   :  { %12 = vsyncpa [#allocation5 + $0x1], 0  ;;  %s812_s15 = smov 0   ;;  %s814_s16 = smov 0  }
   0x2   :  { %s816_s17 = smov 0   ;;  %s818_s18 = smov 0  }
   0x3   :  { %s820_s19 = smov 0   ;;  %s822_s20 = smov 0  }
   0x4 LB: > { %s622_s21 = sadd.s32 4294967295, %s781_s20   ;;  %s37_s22 = sadd.s32 1, %s777_s19  ;;  %s781_s20 = sphi %s822_s20, %s18_s20   ;;  %s777_s19 = sphi %s820_s19, %s1029_s19   ;;  %s773_s18 = sphi %s818_s18, %s1028_s18   ;;  %s769_s17 = sphi %s816_s17, %s1027_s17   ;;  %s765_s16 = sphi %s814_s16, %s1026_s16   ;;  %s761_s15 = sphi %s812_s15, %s1025_s15  }
   0x5   : > { %p39_p0 = scmp.ge.s32.totalorder %s37_s22, 2  ;;  %s48_s23 = sadd.s32 1, %s769_s17 }
   0x6   : > { %p55_p1 = scmp.ne.s32.totalorder %s769_s17, %s765_s16  ;;  %p56_p2 = scmp.eq.s32.totalorder %s781_s20, 0 }
   0x7   : > { %s1031_s22 = smov (%p39_p0, %s37_s22), 0  ;;  %p61_p4 = scmp.ne.s32.totalorder %s765_s16, %s761_s15 }
   0x8   : > { %p848_p3 = por %p56_p2, %p55_p1  ;;  %s43_s25 = ssub.s32 %s777_s19, %s1031_s22 }
   0x9   : > { %p62_p5 = scmp.eq.s32.totalorder %s622_s21, 0  ;;  %p46_p6 = scmp.eq.s32.totalorder %s43_s25, 0 }
   0xa   : > { %p641_p8 = scmp.lt.s32.totalorder %s781_s20, 2  ;;  %s195_s28 = sand.u32 1, %s769_s17  }
   0xb   : > { %p855_p7 = por %p62_p5, %p61_p4  ;;  %s634_s29 = sshll.u32 %s777_s19, 7 }
   0xc   : > { %s861_s27 = scalar_select %p46_p6, %s769_s17, %s48_s23  }
   0xd   : > { %s626_s30 = sshll.u32 %s195_s28, 3  ;;  %s868_s7 = scalar_lea.hbm %s1009_s0, %s634_s29 }
   0xe   : > { %s199_s8 = scalar_lea.vmem [#allocation4], %s626_s30  ;;  %p872_p9 = pnand %p641_p8, %p848_p3 }
   0xf   : > { %s210_s9 = sshll.u32 %s199_s8, 4  ;;  %s196_s11 = scalar_lea.sflag [#allocation5], %s195_s28  ;;  %s876_s9 = int_to_ptr.vmem [resolvable:$true] %s210_s9 }
  0x10   : > { %s701_s12 = scalar_lea.hbm %s868_s7, 128  ;;  %p703_p13 = pneg %p872_p9 }
  0x11   : > { %p702_p12 = scmp.ne.s32.totalorder %s868_s7, %s701_s12  ;;  %s706_s15 = scalar_lea.hbm %s1009_s0, 256 }
  0x12   : > { %p707_p2 = scmp.lt.u32.totalorder %s868_s7, %s1009_s0  ;;  %p708_p3 = scmp.lt.u32.totalorder %s706_s15, %s701_s12 }
  0x13   : > { %p704_p0 = pnand %p703_p13, %p702_p12  ;;  %p710_p5 = scmp.lt.u32.totalorder %s701_s12, %s868_s7 }
  0x14   : > { %p709_p4 = por %p708_p3, %p707_p2 }
  0x15   : > { %p705_p1 = pneg %p704_p0 }
  0x16   : > { %p711_p6 = por %p710_p5, %p709_p4 }
  0x18   : > { %p712_p8 = pnand %p711_p6, %p705_p1 }
  0x1a   : > { %715 = shalt.err (!%p712_p8)
}
  0x1b   : > { %s716_s24 = scalar_lea.vmem %s876_s9, 128  ;;  %s783_s25 = smov [#allocation4]  }
  0x1c   : > { %p717_p12 = scmp.ne.s32.totalorder %s876_s9, %s716_s24  ;;  %s721_s28 = sshll.u32 %s783_s25, 4  ;;  %s722_s28 = int_to_ptr.vmem [resolvable:$false] %s721_s28 }
  0x1d   : > { %s723_s29 = scalar_lea.vmem %s722_s28, 256  ;;  %p724_p11 = scmp.lt.s32.totalorder %s876_s9, %s722_s28 }
  0x1e   : > { %p719_p0 = pnand %p717_p12, %p703_p13  ;;  %p725_p2 = scmp.lt.s32.totalorder %s723_s29, %s716_s24 }
  0x20   : > { %p720_p10 = pneg %p719_p0  ;;  %p726_p3 = por %p725_p2, %p724_p11 }
  0x22   : > { %p727_p4 = pnand %p726_p3, %p720_p10 }
  0x24   : > { %730 = shalt.err (!%p727_p4)
}
  0x25   : > { %640 = dma.hbm_to_vmem [thread:$0]  (!%p872_p9), %s868_s7, 128, %s876_s9, %s196_s11  }
  0x26   : > { %p1017_p1 = scmp.lt.s32.totalorder %s781_s20, 3  ;;  %p1018_p5 = scmp.ge.s32.totalorder %s781_s20, 1 }
  0x28   : > { %p230_p13 = pnand %p1018_p5, %p1017_p1 }
  0x29   : > { %s235_s30 = sand.u32 (!%p230_p13), 1, %s765_s16  }
  0x2a   : > { %233 = sbr.rel (%p230_p13) target bundleno = 362 (0x16a), region = 32  ;;  %s630_s5 = sshll.u32 (!%p230_p13), %s235_s30, 3 }
  0x2b   : > { %s236_s6 = scalar_lea.sflag (!%p230_p13), [#allocation5], %s235_s30  ;;  %s239_s8 = scalar_lea.vmem (!%p230_p13), [#allocation4], %s630_s5 }
  0x31   : > { %756 = dma.done.wait (%p855_p7), %s236_s6, 128  }
  0x32   : > { %758 = vsyncadd (%p855_p7), %s236_s6, 4294967168  ;;  %v303_v0 = vlaneseq  ;;  %v784_v1 = vmov 0   ;;  %v785_v3 = vmov 0.0   ;;  %v311_v4 = vld [vmem:[%s1011_s2] sm:$0xf]  ;;  %v309_v5 = vld [vmem:[%s239_s8] sm:$0xff] }
  0x33   : > { %693 = vset.pattern.permute.xlu0 %v784_v1  ;;  %v314_v6 = vcombine.high %v309_v5, %v309_v5  ;;  %vm316_vm1 = vcmask 1043456   ;;  %p280_p7 = scmp.lt.s32.totalorder %s773_s18, 1  ;;  %vm476_vm5 = vcmask 1040384   ;;  %vm482_vm6 = vcmask 0  }
  0x34   : > { %vm914_vm0 = vcmp.lt.s32.totalorder %v303_v0, 256  ;;  %391 = vperm.xlu0 %693, %v311_v4   ;;  %v317_v7 = vsel %vm316_vm1, %v309_v5, -inf  ;;  %v934_v28 = vshrl.u32 %v303_v0, 7 }
  0x35   : > { %307 = vst.msk [vmem:[#allocation2] sm:$0x3] %vm914_vm0, %v785_v3  ;;  %308 = vst.msk [vmem:[#allocation3] sm:$0x3] %vm914_vm0, %v785_v3  ;;  %v324_v8 = vsel %vm316_vm1, %v314_v6, -inf  ;;  %v318_v9 = vrot.slane %v317_v7, 4 }
  0x36   : > { %v325_v10 = vrot.slane %v324_v8, 4  ;;  %s1033_s18 = smov (!%p280_p7, %s773_s18), 1  ;;  %v940_v31 = vsub.s32 0, %v934_v28  ;;  %v943_v32 = vsub.s32 1, %v934_v28  ;;  %v786_v3 = vmov 1966171168  }
  0x37   : > { %v319_v11 = vmax.f32 %v317_v7, %v318_v9  ;;  %s631_s26 = sshll.u32 %s1033_s18, 1  ;;  %v416_v4 = vunpack.c.l.s4 %v786_v3  ;;  %s297_s15 = scalar_lea.vmem %s1013_s4, %s1033_s18 }
  0x38   : > { %v326_v12 = vmax.f32 %v324_v8, %v325_v10  ;;  %s286_s12 = scalar_lea.vmem %s1010_s1, %s631_s26  ;;  %s292_s24 = scalar_lea.vmem %s1012_s3, %s1033_s18 }
  0x39   : > { %v320_v13 = vrot.slane %v319_v11, 2  ;;  %v945_v34 = vld [vmem:[%s286_s12] sm:$0x3] }
  0x3a   : > { %v327_v14 = vrot.slane %v326_v12, 2  ;;  %v366_v37 = vrot.slane %v945_v34, %v940_v31  ;;  %v370_v38 = vrot.slane %v945_v34, %v943_v32  ;;  %vm312_vm4 = vcmp.ne.s32.totalorder %v945_v34, 255 }
  0x3b   : > { %v321_v15 = vmax.f32 %v319_v11, %v320_v13 }
  0x3c   : > { %v328_v16 = vmax.f32 %v326_v12, %v327_v14  ;;  %vm952_vm2 = vcmp.eq.s32.totalorder %v934_v28, %v366_v37  ;;  %vm957_vm3 = vcmp.eq.s32.totalorder %v934_v28, %v370_v38 }
  0x3d   : > { %v322_v17 = vrot.slane %v321_v15, 1  ;;  %v373_v44 = vsel %vm952_vm2, %v309_v5, 0.0  ;;  %v374_v45 = vsel %vm957_vm3, %v314_v6, 0.0 }
  0x3e   : > { %v329_v18 = vrot.slane %v328_v16, 1  ;;  %v375_v48 = vsel %vm316_vm1, %v373_v44, 0.0  ;;  %v382_v49 = vsel %vm316_vm1, %v374_v45, 0.0 }
  0x3f   : > { %v323_v19 = vmax.f32 %v321_v15, %v322_v17  ;;  %v376_v52 = vrot.slane %v375_v48, 4  ;;  %v383_v53 = vrot.slane %v382_v49, 4 }
  0x40   : > { %v330_v20 = vmax.f32 %v328_v16, %v329_v18  ;;  %v417_v18 = vunpack.c.0.s8 %v416_v4 }
  0x41   : > { %v377_v54 = vadd.f32 %v376_v52, %v375_v48  ;;  %v384_v55 = vadd.f32 %v383_v53, %v382_v49 }
  0x42   : > { %v333_v21 = vcombine.low %v323_v19, %v330_v20 }
  0x43   : > { %v378_v56 = vrot.slane %v377_v54, 2  ;;  %v385_v57 = vrot.slane %v384_v55, 2 }
  0x44   : > { %v335_v22 = vsub.f32 %v309_v5, %v333_v21 }
  0x45   : > { %v379_v58 = vadd.f32 %v378_v56, %v377_v54  ;;  %v386_v59 = vadd.f32 %v385_v57, %v384_v55 }
  0x46   : > { %v336_v23 = vmul.f32 1.442695, %v335_v22 }
  0x47   : > { %v380_v62 = vrot.slane %v379_v58, 1  ;;  %v387_v63 = vrot.slane %v386_v59, 1 }
  0x48   : > { %695 = vpow2.f32 %v336_v23 }
  0x49   : > { %v381_v6 = vadd.f32 %v380_v62, %v379_v58  ;;  %v388_v7 = vadd.f32 %v387_v63, %v386_v59 }
  0x52   : > { %v696_v24 = vpop.eup %695 }
  0x53   : > { %v339_v25 = vcombine.high %v696_v24, %v696_v24  ;;  %v341_v26 = vsel %vm316_vm1, %v696_v24, 0.0 }
  0x54   : > { %v342_v29 = vrot.slane %v341_v26, 4 }
  0x55   : > { %v348_v27 = vsel %vm316_vm1, %v339_v25, 0.0 }
  0x56   : > { %v349_v30 = vrot.slane %v348_v27, 4  ;;  %v343_v33 = vadd.f32 %v342_v29, %v341_v26 }
  0x58   : > { %v350_v35 = vadd.f32 %v349_v30, %v348_v27  ;;  %v344_v36 = vrot.slane %v343_v33, 2  ;;  %v420_v27 = vsub.s32 %v417_v18, %v934_v28 }
  0x5a   : > { %v351_v39 = vrot.slane %v350_v35, 2  ;;  %v345_v40 = vadd.f32 %v344_v36, %v343_v33 }
  0x5c   : > { %v352_v43 = vadd.f32 %v351_v39, %v350_v35  ;;  %v346_v46 = vrot.slane %v345_v40, 1 }
  0x5e   : > { %v353_v47 = vrot.slane %v352_v43, 1  ;;  %v347_v50 = vadd.f32 %v346_v46, %v345_v40  ;;  %v458_v40 = vld [vmem:[#allocation3] sm:$0x3] }
  0x60   : > { %v354_v51 = vadd.f32 %v353_v47, %v352_v43  ;;  %697 = vlog2.f32 %v347_v50  ;;  %v451_v43 = vld [vmem:[#allocation2] sm:$0x3] }
  0x62   : > { %699 = vlog2.f32 %v354_v51 }
  0x6a   : > { %v698_v60 = vpop.eup %697 }
  0x6b   : > { %v356_v0 = vmul.f32 0.6931472, %v698_v60 }
  0x6c   : > { %v700_v61 = vpop.eup %699 }
  0x6d   : > { %v358_v1 = vmul.f32 0.6931472, %v700_v61  ;;  %v359_v10 = vadd.f32 %v356_v0, %v323_v19 }
  0x6f   : > { %v360_v11 = vadd.f32 %v358_v1, %v330_v20  ;;  %v410_v21 = vsub.f32 %v359_v10, %v381_v6 }
  0x71   : > { %v411_v22 = vsub.f32 %v360_v11, %v388_v7 }
  0x73   : > { %v433_v29 = vcombine.low %v410_v21, %v411_v22 }
  0x75   : > { %v440_v35 = vrot.slane %v433_v29, %v420_v27 }
  0x77   : > { %v447_v38 = vrot.slane %v440_v35, %v420_v27 }
  0xb3   : > { %v392_v5 = vpop.permute.xlu0 %391 }
  0xb4   : > { %v394_v8 = vsel %vm952_vm2, %v392_v5, 0.0  ;;  %v395_v9 = vsel %vm957_vm3, %v392_v5, 0.0 }
  0xb5   : > { %v396_v12 = vsel %vm316_vm1, %v394_v8, 0.0  ;;  %v403_v13 = vsel %vm316_vm1, %v395_v9, 0.0 }
  0xb6   : > { %v397_v14 = vrot.slane %v396_v12, 4  ;;  %v404_v15 = vrot.slane %v403_v13, 4 }
  0xb8   : > { %v398_v16 = vadd.f32 %v397_v14, %v396_v12  ;;  %v405_v17 = vadd.f32 %v404_v15, %v403_v13 }
  0xba   : > { %v399_v23 = vrot.slane %v398_v16, 2  ;;  %v406_v24 = vrot.slane %v405_v17, 2 }
  0xbc   : > { %v400_v25 = vadd.f32 %v399_v23, %v398_v16  ;;  %v407_v26 = vadd.f32 %v406_v24, %v405_v17 }
  0xbe   : > { %v401_v19 = vrot.slane %v400_v25, 1  ;;  %v408_v20 = vrot.slane %v407_v26, 1 }
  0xc0   : > { %v402_v30 = vadd.f32 %v401_v19, %v400_v25  ;;  %v409_v33 = vadd.f32 %v408_v20, %v407_v26 }
  0xc2   : > { %v414_v36 = vcombine.low %v402_v30, %v409_v33 }
  0xc4   : > { %v421_v37 = vrot.slane %v414_v36, %v420_v27 }
  0xc6   : > { %v428_v39 = vrot.slane %v421_v37, %v420_v27 }
  0xc8   : > { %v430_v41 = vsel %vm312_vm4, %v428_v39, 0.0 }
  0xc9   : > { %v449_v42 = vmul.f32 %v447_v38, %v430_v41  ;;  %v459_v44 = vadd.f32 %v458_v40, %v430_v41 }
  0xcb   : > { %v450_v45 = vsel %vm312_vm4, %v449_v42, 0.0  ;;  %460 = vst.msk [vmem:[#allocation3] sm:$0x3] %vm914_vm0, %v459_v44 }
  0xcc   : > { %v452_v28 = vadd.f32 %v451_v43, %v450_v45 }
  0xce   : > { %457 = vst.msk [vmem:[#allocation2] sm:$0x3] %vm914_vm0, %v452_v28 }
  0xd2   : > { %v484_v46 = vld [vmem:[#allocation3] sm:$0x3] }
  0xd3   : > { %v489_v34 = vrot.slane %v484_v46, %v940_v31  ;;  %v493_v47 = vrot.slane %v484_v46, %v943_v32 }
  0xd5   : > { %v496_v48 = vsel %vm476_vm5, %v489_v34, 0.0  ;;  %v497_v49 = vsel %vm476_vm5, %v493_v47, 0.0  ;;  %v464_v50 = vld [vmem:[#allocation2] sm:$0x3] }
  0xd6   : > { %v498_v51 = vadd.f32 %v497_v49, %v496_v48  ;;  %v469_v52 = vrot.slane %v464_v50, %v940_v31  ;;  %v473_v53 = vrot.slane %v464_v50, %v943_v32 }
  0xd8   : > { %499 = vadd.xlane.f32.xlu1 %v498_v51  ;;  %v477_v54 = vsel %vm476_vm5, %v469_v52, 0.0  ;;  %v478_v2 = vsel %vm476_vm5, %v473_v53, 0.0 }
  0xd9   : > { %v479_v55 = vadd.f32 %v478_v2, %v477_v54 }
  0xdb   : > { %480 = vadd.xlane.f32.xlu0 %v479_v55 }
 0x165   : > { %v500_v56 = vpop.xlane.xlu1 %499 }
 0x166   : > { %501 = vst.msk [vmem:[%s297_s15] sm:$0x1] %vm482_vm6, %v500_v56 }
 0x168   : > { %v481_v57 = vpop.xlane.xlu0 %480 }
 0x169   : > { %483 = vst.msk [vmem:[%s292_s24] sm:$0x1] %vm482_vm6, %v481_v57 }
 0x16a PF: > { %s18_s20 = sadd.s32 1, %s781_s20   ;;  %s1025_s15 = smov %s765_s16 }
 0x16b   : > { %p15_p9 = scmp.ge.s32.totalorder %s18_s20, 4   ;;  %s1026_s16 = smov %s769_s17 }
 0x16c   : > { %s1027_s17 = smov %s861_s27  ;;  %s1028_s18 = smov %s777_s19 }
 0x16d   : > { %s1029_s19 = smov %s1031_s22  ;;  %17 = sbr.rel (!%p15_p9) target bundleno = 4 (0x4), region = 95 }
 0x174   :  { %537 = vsyncpa [#allocation5], 1 }
 0x175   :  { %539 = vsyncpa [#allocation5 + $0x1], 1 }

</bundles_post_ra>
